<compile_context>
chip_gen: v7x
topology: tpu7x:2x2x1
jax: 0.10.0
libtpu: 0.0.40
codegen_flags: <defaults>
</compile_context>

<pallas_src>
import jax
import jax.numpy as jnp
from jax.experimental import pallas as pl
from jax.experimental.pallas import tpu as pltpu

NUM_HEADS = 4
LN_EPS = 1e-5
NEG_BIG = -1e9   # finite additive mask (documented deviation from -inf)

PARAM_ORDER = ("wqkv_h", "bqkv_h", "wo_h", "bo", "g1", "be1",
               "w1", "b1", "w2", "b2", "g2", "be2")


def _layer_norm(x, gain, bias):
    mu = jnp.mean(x, axis=-1, keepdims=True)
    var = jnp.mean((x - mu) ** 2, axis=-1, keepdims=True)
    return (x - mu) * jax.lax.rsqrt(var + LN_EPS) * gain + bias


def encoder_kernel(src_ref, bias_ref,
                   wqkv_ref, bqkv_ref, wo_ref, bo_ref,
                   g1_ref, be1_ref, w1_ref, b1_ref, w2_ref, b2_ref,
                   g2_ref, be2_ref,
                   out_ref, acc_ref):
    """Grid = (batch, layer).  acc_ref holds the residual stream across layers."""
    layer = pl.program_id(1)

    @pl.when(layer == 0)
    def _():
        acc_ref[...] = src_ref[0].astype(jnp.float32)

    x = acc_ref[...]                       # (S, E) f32 residual stream
    neg_bias = bias_ref[0]                 # (1, S) f32 additive key-padding bias

    S, E = x.shape
    H = NUM_HEADS
    Dh = E // H
    scale = 1.0 / float(Dh) ** 0.5

    x_bf = x.astype(jnp.bfloat16)
    xh = jnp.broadcast_to(x_bf, (H, S, E))       # head-batched tokens

    # --- fused, head-batched QKV projection: (H,S,E) @ (H,E,3Dh) -> (H,S,3Dh)
    qkv = jnp.einsum('hse,hef->hsf', xh, wqkv_ref[...],
                     preferred_element_type=jnp.float32) + bqkv_ref[...]
    q = qkv[:, :, 0:Dh]                    # (H, S, Dh) f32
    k = qkv[:, :, Dh:2 * Dh]
    v = qkv[:, :, 2 * Dh:3 * Dh]

    # --- all-head attention (batch-leading einsums, bf16 MXU / f32 accumulate)
    s = jnp.einsum('hqd,hkd->hqk',
                   q.astype(jnp.bfloat16), k.astype(jnp.bfloat16),
                   preferred_element_type=jnp.float32)
    s = s * scale + neg_bias               # (1,S) broadcasts over (H, Sq, Sk)
    m = jnp.max(s, axis=-1, keepdims=True)
    e = jnp.exp(s - m)
    p = e * pl.reciprocal(jnp.sum(e, axis=-1, keepdims=True), approx=True)

    ctx = jnp.einsum('hqk,hkd->hqd',
                     p.astype(jnp.bfloat16), v.astype(jnp.bfloat16),
                     preferred_element_type=jnp.float32)     # (H, S, Dh)

    # --- output projection folded per head, reduced over heads (no concat)
    proj = jnp.einsum('hsd,hde->hse',
                      ctx.astype(jnp.bfloat16), wo_ref[...],
                      preferred_element_type=jnp.float32)    # (H, S, E)
    attn = jnp.sum(proj, axis=0) + bo_ref[...]               # (S, E)

    # --- residual + LayerNorm 1 (post-norm)
    y = _layer_norm(x + attn, g1_ref[...], be1_ref[...])

    # --- feed-forward (bf16 matmuls, f32 accumulate / elementwise)
    h1 = jnp.dot(y.astype(jnp.bfloat16), w1_ref[...],
                 preferred_element_type=jnp.float32) + b1_ref[...]
    h1 = jnp.maximum(h1, 0.0)
    h2 = jnp.dot(h1.astype(jnp.bfloat16), w2_ref[...],
                 preferred_element_type=jnp.float32) + b2_ref[...]

    # --- residual + LayerNorm 2
    z = _layer_norm(y + h2, g2_ref[...], be2_ref[...])
    acc_ref[...] = z

    @pl.when(layer == pl.num_programs(1) - 1)
    def _():
        out_ref[0] = z.astype(out_ref.dtype)


def encoder_forward(src, src_padding_mask, params, num_layers):
    """Encoder.forward: num_layers identical layers fused into one pallas_call."""
    B, S, E = src.shape
    attn_bias = jnp.where(src_padding_mask, NEG_BIG, 0.0).astype(jnp.float32)[:, None, :]

    act_spec = pl.BlockSpec((1, S, E), lambda b, l: (b, 0, 0))
    bias_spec = pl.BlockSpec((1, 1, S), lambda b, l: (b, 0, 0))

    def rep_spec(shape):
        nd = len(shape)
        return pl.BlockSpec(shape, lambda b, l, _nd=nd: (0,) * _nd)

    in_specs = [act_spec, bias_spec] + [rep_spec(params[k].shape) for k in PARAM_ORDER]

    return pl.pallas_call(
        encoder_kernel,
        out_shape=jax.ShapeDtypeStruct((B, S, E), src.dtype),
        grid_spec=pltpu.PrefetchScalarGridSpec(
            num_scalar_prefetch=0,
            grid=(B, num_layers),              # batch parallel, layers sequential
            in_specs=in_specs,
            out_specs=act_spec,
            scratch_shapes=[pltpu.VMEM((S, E), jnp.float32)],
        ),
        compiler_params=pltpu.CompilerParams(
            dimension_semantics=("parallel", "arbitrary")),
    )(src, attn_bias, *[params[k] for k in PARAM_ORDER])


def make_layer_params(key, embed_dim, d_ff):
    """Synthetic init for one encoder layer (shared by all layers: deepcopy)."""
    E, F = embed_dim, d_ff
    H = NUM_HEADS
    Dh = E // H
    ks = jax.random.split(key, 6)
    s = 0.02
    wq = s * jax.random.normal(ks[0], (E, E), jnp.float32)
    wk = s * jax.random.normal(ks[1], (E, E), jnp.float32)
    wv = s * jax.random.normal(ks[2], (E, E), jnp.float32)
    wo = s * jax.random.normal(ks[3], (E, E), jnp.float32)
    w1 = s * jax.random.normal(ks[4], (E, F), jnp.float32)
    w2 = s * jax.random.normal(ks[5], (F, E), jnp.float32)

    def to_heads(w):                               # (E, E) -> (H, E, Dh)
        return jnp.transpose(w.reshape(E, H, Dh), (1, 0, 2))

    wqkv_h = jnp.concatenate([to_heads(wq), to_heads(wk), to_heads(wv)], axis=-1)

    return {
        "wqkv_h": wqkv_h.astype(jnp.bfloat16),              # (H, E, 3*Dh)
        "bqkv_h": jnp.zeros((H, 1, 3 * Dh), jnp.float32),
        "wo_h": wo.reshape(H, Dh, E).astype(jnp.bfloat16),   # (H, Dh, E)
        "bo": jnp.zeros((1, E), jnp.float32),
        "g1": jnp.ones((1, E), jnp.float32),
        "be1": jnp.zeros((1, E), jnp.float32),
        "w1": w1.astype(jnp.bfloat16),
        "b1": jnp.zeros((1, F), jnp.float32),
        "w2": w2.astype(jnp.bfloat16),
        "b2": jnp.zeros((1, E), jnp.float32),
        "g2": jnp.ones((1, E), jnp.float32),
        "be2": jnp.zeros((1, E), jnp.float32),
    }


if __name__ == "__main__":
    B, S, E, D_FF = 2, 8, 32, 64
    NUM_LAYERS = 2

    key = jax.random.PRNGKey(0)
    k_src, k_par = jax.random.split(key)

    src = jax.random.normal(k_src, (B, S, E), jnp.float32)
    # src_padding_mask: True = padded. Pad the last 2 positions of batch 1.
    src_padding_mask = jnp.zeros((B, S), dtype=bool).at[1, S - 2:].set(True)

    params = make_layer_params(k_par, E, D_FF)

    out = encoder_forward(src, src_padding_mask, params, NUM_LAYERS)
    out = jax.block_until_ready(out)
    assert out.shape == (B, S, E) and bool(jnp.all(jnp.isfinite(out)))
    print("KERNEL_OK")
</pallas_src>

<mosaic_0001>
module attributes {stable_mosaic.version = 11 : i64} {
  func.func @encoder_kernel(%arg0: i32, %arg1: i32, %arg2: memref<1x8x32xf32, #tpu.memory_space<vmem>>, %arg3: memref<1x1x8xf32, #tpu.memory_space<vmem>>, %arg4: memref<4x32x24xbf16, #tpu.memory_space<vmem>>, %arg5: memref<4x1x24xf32, #tpu.memory_space<vmem>>, %arg6: memref<4x8x32xbf16, #tpu.memory_space<vmem>>, %arg7: memref<1x32xf32, #tpu.memory_space<vmem>>, %arg8: memref<1x32xf32, #tpu.memory_space<vmem>>, %arg9: memref<1x32xf32, #tpu.memory_space<vmem>>, %arg10: memref<32x64xbf16, #tpu.memory_space<vmem>>, %arg11: memref<1x64xf32, #tpu.memory_space<vmem>>, %arg12: memref<64x32xbf16, #tpu.memory_space<vmem>>, %arg13: memref<1x32xf32, #tpu.memory_space<vmem>>, %arg14: memref<1x32xf32, #tpu.memory_space<vmem>>, %arg15: memref<1x32xf32, #tpu.memory_space<vmem>>, %arg16: memref<1x8x32xf32, #tpu.memory_space<vmem>>, %arg17: memref<8x32xf32, #tpu.memory_space<vmem>>) attributes {dimension_semantics = [#tpu.dimension_semantics<parallel>, #tpu.dimension_semantics<arbitrary>], iteration_bounds = array<i64: 2, 2>, scalar_prefetch = 0 : i64, scratch_operands = 1 : i64, tpu.core_type = #tpu.core_type<tc>, window_params = [{transform_indices = @transform_0, window_bounds = array<i64: 1, 8, 32>}, {transform_indices = @transform_1, window_bounds = array<i64: 1, 1, 8>}, {pipeline_mode = #tpu.pipeline_mode<synchronous>, transform_indices = @transform_2, window_bounds = array<i64: 4, 32, 24>}, {pipeline_mode = #tpu.pipeline_mode<synchronous>, transform_indices = @transform_3, window_bounds = array<i64: 4, 1, 24>}, {pipeline_mode = #tpu.pipeline_mode<synchronous>, transform_indices = @transform_4, window_bounds = array<i64: 4, 8, 32>}, {pipeline_mode = #tpu.pipeline_mode<synchronous>, transform_indices = @transform_5, window_bounds = array<i64: 1, 32>}, {pipeline_mode = #tpu.pipeline_mode<synchronous>, transform_indices = @transform_6, window_bounds = array<i64: 1, 32>}, {pipeline_mode = #tpu.pipeline_mode<synchronous>, transform_indices = @transform_7, window_bounds = array<i64: 1, 32>}, {pipeline_mode = #tpu.pipeline_mode<synchronous>, transform_indices = @transform_8, window_bounds = array<i64: 32, 64>}, {pipeline_mode = #tpu.pipeline_mode<synchronous>, transform_indices = @transform_9, window_bounds = array<i64: 1, 64>}, {pipeline_mode = #tpu.pipeline_mode<synchronous>, transform_indices = @transform_10, window_bounds = array<i64: 64, 32>}, {pipeline_mode = #tpu.pipeline_mode<synchronous>, transform_indices = @transform_11, window_bounds = array<i64: 1, 32>}, {pipeline_mode = #tpu.pipeline_mode<synchronous>, transform_indices = @transform_12, window_bounds = array<i64: 1, 32>}, {pipeline_mode = #tpu.pipeline_mode<synchronous>, transform_indices = @transform_13, window_bounds = array<i64: 1, 32>}, {transform_indices = @transform_14, window_bounds = array<i64: 1, 8, 32>}]} {
    %c0_i32 = arith.constant 0 : i32
    %0 = arith.cmpi eq, %arg1, %c0_i32 : i32
    %1 = arith.extui %0 : i1 to i32
    %c0_i32_0 = arith.constant 0 : i32
    %2 = arith.cmpi ne, %1, %c0_i32_0 : i32
    scf.if %2 {
      %c0_55 = arith.constant 0 : index
      %c0_56 = arith.constant 0 : index
      %c0_57 = arith.constant 0 : index
      %113 = vector.load %arg2[%c0_55, %c0_56, %c0_57] : memref<1x8x32xf32, #tpu.memory_space<vmem>>, vector<1x8x32xf32>
      %114 = vector.shape_cast %113 : vector<1x8x32xf32> to vector<8x32xf32>
      %c0_58 = arith.constant 0 : index
      %c0_59 = arith.constant 0 : index
      %115 = vector.load %arg17[%c0_58, %c0_59] : memref<8x32xf32, #tpu.memory_space<vmem>>, vector<8x32xf32>
      tpu.vector_store %arg17[%c0_58, %c0_59], %114 {strides = array<i32>} : memref<8x32xf32, #tpu.memory_space<vmem>>, vector<8x32xf32>,
    } else {
    }
    %c0 = arith.constant 0 : index
    %c0_1 = arith.constant 0 : index
    %3 = vector.load %arg17[%c0, %c0_1] : memref<8x32xf32, #tpu.memory_space<vmem>>, vector<8x32xf32>
    %c0_2 = arith.constant 0 : index
    %c0_3 = arith.constant 0 : index
    %c0_4 = arith.constant 0 : index
    %4 = vector.load %arg3[%c0_2, %c0_3, %c0_4] : memref<1x1x8xf32, #tpu.memory_space<vmem>>, vector<1x1x8xf32>
    %5 = vector.shape_cast %4 : vector<1x1x8xf32> to vector<1x8xf32>
    %6 = arith.truncf %3 : vector<8x32xf32> to vector<8x32xbf16>
    %7 = vector.shape_cast %6 : vector<8x32xbf16> to vector<1x8x32xbf16>
    %8 = vector.broadcast %7 : vector<1x8x32xbf16> to vector<4x8x32xbf16>
    %c0_5 = arith.constant 0 : index
    %c0_6 = arith.constant 0 : index
    %c0_7 = arith.constant 0 : index
    %9 = vector.load %arg4[%c0_5, %c0_6, %c0_7] : memref<4x32x24xbf16, #tpu.memory_space<vmem>>, vector<4x32x24xbf16>
    "tpu.trace_start"() <{level = 10 : i32, message = "hse,hef->hsf"}> : () -> ()
    %cst = arith.constant dense<0.000000e+00> : vector<4x8x24xf32>
    %10 = tpu.matmul %8, %9, %cst {dimension_numbers = #tpu.dot_dimension_numbers<[2], [1], [1], [2], [0, 0, 0, 1, 1, 2], [0], [0]>} : vector<4x8x32xbf16>, vector<4x32x24xbf16>, vector<4x8x24xf32> -> vector<4x8x24xf32>
    "tpu.trace_stop"() : () -> ()
    %c0_8 = arith.constant 0 : index
    %c0_9 = arith.constant 0 : index
    %c0_10 = arith.constant 0 : index
    %11 = vector.load %arg5[%c0_8, %c0_9, %c0_10] : memref<4x1x24xf32, #tpu.memory_space<vmem>>, vector<4x1x24xf32>
    %12 = vector.broadcast %11 : vector<4x1x24xf32> to vector<4x8x24xf32>
    %13 = arith.addf %10, %12 : vector<4x8x24xf32>
    %14 = vector.extract_strided_slice %13 {offsets = [0, 0, 0], sizes = [4, 8, 8], strides = [1, 1, 1]} : vector<4x8x24xf32> to vector<4x8x8xf32>
    %15 = vector.extract_strided_slice %13 {offsets = [0, 0, 8], sizes = [4, 8, 8], strides = [1, 1, 1]} : vector<4x8x24xf32> to vector<4x8x8xf32>
    %16 = vector.extract_strided_slice %13 {offsets = [0, 0, 16], sizes = [4, 8, 8], strides = [1, 1, 1]} : vector<4x8x24xf32> to vector<4x8x8xf32>
    %17 = arith.truncf %14 : vector<4x8x8xf32> to vector<4x8x8xbf16>
    %18 = arith.truncf %15 : vector<4x8x8xf32> to vector<4x8x8xbf16>
    "tpu.trace_start"() <{level = 10 : i32, message = "hqd,hkd->hqk"}> : () -> ()
    %cst_11 = arith.constant dense<0.000000e+00> : vector<4x8x8xf32>
    %19 = tpu.matmul %17, %18, %cst_11 {dimension_numbers = #tpu.dot_dimension_numbers<[2], [2], [1], [1], [0, 0, 0, 1, 1, 1], [0], [0]>} : vector<4x8x8xbf16>, vector<4x8x8xbf16>, vector<4x8x8xf32> -> vector<4x8x8xf32>
    "tpu.trace_stop"() : () -> ()
    %cst_12 = arith.constant 0.353553385 : f32
    %20 = vector.broadcast %cst_12 : f32 to vector<4x8x8xf32>
    %21 = arith.mulf %19, %20 : vector<4x8x8xf32>
    %22 = vector.shape_cast %5 : vector<1x8xf32> to vector<1x1x8xf32>
    %23 = vector.broadcast %22 : vector<1x1x8xf32> to vector<4x8x8xf32>
    %24 = arith.addf %21, %23 : vector<4x8x8xf32>
    %cst_13 = arith.constant dense<0xFF800000> : vector<4x8xf32>
    %25 = vector.multi_reduction <maximumf>, %24, %cst_13 [2] : vector<4x8x8xf32> to vector<4x8xf32>
    %26 = vector.shape_cast %25 : vector<4x8xf32> to vector<4x8x1xf32>
    %27 = vector.broadcast %26 : vector<4x8x1xf32> to vector<4x8x8xf32>
    %28 = arith.subf %24, %27 : vector<4x8x8xf32>
    %29 = math.exp %28 : vector<4x8x8xf32>
    %cst_14 = arith.constant dense<0.000000e+00> : vector<4x8xf32>
    %30 = vector.multi_reduction <add>, %29, %cst_14 [2] : vector<4x8x8xf32> to vector<4x8xf32>
    %31 = vector.shape_cast %30 : vector<4x8xf32> to vector<4x8x1xf32>
    %32 = tpu.reciprocal %31 {approx = true} : vector<4x8x1xf32> -> vector<4x8x1xf32>
    %33 = vector.broadcast %32 : vector<4x8x1xf32> to vector<4x8x8xf32>
    %34 = arith.mulf %29, %33 : vector<4x8x8xf32>
    %35 = arith.truncf %34 : vector<4x8x8xf32> to vector<4x8x8xbf16>
    %36 = arith.truncf %16 : vector<4x8x8xf32> to vector<4x8x8xbf16>
    "tpu.trace_start"() <{level = 10 : i32, message = "hqk,hkd->hqd"}> : () -> ()
    %cst_15 = arith.constant dense<0.000000e+00> : vector<4x8x8xf32>
    %37 = tpu.matmul %35, %36, %cst_15 {dimension_numbers = #tpu.dot_dimension_numbers<[2], [1], [1], [2], [0, 0, 0, 1, 1, 2], [0], [0]>} : vector<4x8x8xbf16>, vector<4x8x8xbf16>, vector<4x8x8xf32> -> vector<4x8x8xf32>
    "tpu.trace_stop"() : () -> ()
    %38 = arith.truncf %37 : vector<4x8x8xf32> to vector<4x8x8xbf16>
    %c0_16 = arith.constant 0 : index
    %c0_17 = arith.constant 0 : index
    %c0_18 = arith.constant 0 : index
    %39 = vector.load %arg6[%c0_16, %c0_17, %c0_18] : memref<4x8x32xbf16, #tpu.memory_space<vmem>>, vector<4x8x32xbf16>
    "tpu.trace_start"() <{level = 10 : i32, message = "hsd,hde->hse"}> : () -> ()
    %cst_19 = arith.constant dense<0.000000e+00> : vector<4x8x32xf32>
    %40 = tpu.matmul %38, %39, %cst_19 {dimension_numbers = #tpu.dot_dimension_numbers<[2], [1], [1], [2], [0, 0, 0, 1, 1, 2], [0], [0]>} : vector<4x8x8xbf16>, vector<4x8x32xbf16>, vector<4x8x32xf32> -> vector<4x8x32xf32>
    "tpu.trace_stop"() : () -> ()
    %cst_20 = arith.constant dense<0.000000e+00> : vector<8x32xf32>
    %41 = vector.multi_reduction <add>, %40, %cst_20 [0] : vector<4x8x32xf32> to vector<8x32xf32>
    %c0_21 = arith.constant 0 : index
    %c0_22 = arith.constant 0 : index
    %42 = vector.load %arg7[%c0_21, %c0_22] : memref<1x32xf32, #tpu.memory_space<vmem>>, vector<1x32xf32>
    %43 = vector.broadcast %42 : vector<1x32xf32> to vector<8x32xf32>
    %44 = arith.addf %41, %43 : vector<8x32xf32>
    %45 = arith.addf %3, %44 : vector<8x32xf32>
    %c0_23 = arith.constant 0 : index
    %c0_24 = arith.constant 0 : index
    %46 = vector.load %arg8[%c0_23, %c0_24] : memref<1x32xf32, #tpu.memory_space<vmem>>, vector<1x32xf32>
    %c0_25 = arith.constant 0 : index
    %c0_26 = arith.constant 0 : index
    %47 = vector.load %arg9[%c0_25, %c0_26] : memref<1x32xf32, #tpu.memory_space<vmem>>, vector<1x32xf32>
    %cst_27 = arith.constant dense<0.000000e+00> : vector<8xf32>
    %48 = vector.multi_reduction <add>, %45, %cst_27 [1] : vector<8x32xf32> to vector<8xf32>
    %49 = vector.shape_cast %48 : vector<8xf32> to vector<8x1xf32>
    %cst_28 = arith.constant 3.200000e+01 : f32
    %50 = vector.broadcast %cst_28 : f32 to vector<8x1xf32>
    %51 = arith.divf %49, %50 : vector<8x1xf32>
    %52 = vector.broadcast %51 : vector<8x1xf32> to vector<8x32xf32>
    %53 = arith.subf %45, %52 : vector<8x32xf32>
    %54 = arith.mulf %53, %53 : vector<8x32xf32>
    %cst_29 = arith.constant dense<0.000000e+00> : vector<8xf32>
    %55 = vector.multi_reduction <add>, %54, %cst_29 [1] : vector<8x32xf32> to vector<8xf32>
    %56 = vector.shape_cast %55 : vector<8xf32> to vector<8x1xf32>
    %cst_30 = arith.constant 3.200000e+01 : f32
    %57 = vector.broadcast %cst_30 : f32 to vector<8x1xf32>
    %58 = arith.divf %56, %57 : vector<8x1xf32>
    %59 = vector.broadcast %51 : vector<8x1xf32> to vector<8x32xf32>
    %60 = arith.subf %45, %59 : vector<8x32xf32>
    %cst_31 = arith.constant 9.99999974E-6 : f32
    %61 = vector.broadcast %cst_31 : f32 to vector<8x1xf32>
    %62 = arith.addf %58, %61 : vector<8x1xf32>
    %63 = math.rsqrt %62 : vector<8x1xf32>
    %64 = vector.broadcast %63 : vector<8x1xf32> to vector<8x32xf32>
    %65 = arith.mulf %60, %64 : vector<8x32xf32>
    %66 = vector.broadcast %46 : vector<1x32xf32> to vector<8x32xf32>
    %67 = arith.mulf %65, %66 : vector<8x32xf32>
    %68 = vector.broadcast %47 : vector<1x32xf32> to vector<8x32xf32>
    %69 = arith.addf %67, %68 : vector<8x32xf32>
    %70 = arith.truncf %69 : vector<8x32xf32> to vector<8x32xbf16>
    %c0_32 = arith.constant 0 : index
    %c0_33 = arith.constant 0 : index
    %71 = vector.load %arg10[%c0_32, %c0_33] : memref<32x64xbf16, #tpu.memory_space<vmem>>, vector<32x64xbf16>
    %cst_34 = arith.constant dense<0.000000e+00> : vector<8x64xf32>
    %72 = tpu.matmul %70, %71, %cst_34 {dimension_numbers = #tpu.dot_dimension_numbers<[1], [0], [0], [1], [0, 0, 1, 1], [], []>} : vector<8x32xbf16>, vector<32x64xbf16>, vector<8x64xf32> -> vector<8x64xf32>
    %c0_35 = arith.constant 0 : index
    %c0_36 = arith.constant 0 : index
    %73 = vector.load %arg11[%c0_35, %c0_36] : memref<1x64xf32, #tpu.memory_space<vmem>>, vector<1x64xf32>
    %74 = vector.broadcast %73 : vector<1x64xf32> to vector<8x64xf32>
    %75 = arith.addf %72, %74 : vector<8x64xf32>
    %cst_37 = arith.constant 0.000000e+00 : f32
    %76 = vector.broadcast %cst_37 : f32 to vector<8x64xf32>
    %77 = arith.maximumf %75, %76 : vector<8x64xf32>
    %78 = arith.truncf %77 : vector<8x64xf32> to vector<8x64xbf16>
    %c0_38 = arith.constant 0 : index
    %c0_39 = arith.constant 0 : index
    %79 = vector.load %arg12[%c0_38, %c0_39] : memref<64x32xbf16, #tpu.memory_space<vmem>>, vector<64x32xbf16>
    %cst_40 = arith.constant dense<0.000000e+00> : vector<8x32xf32>
    %80 = tpu.matmul %78, %79, %cst_40 {dimension_numbers = #tpu.dot_dimension_numbers<[1], [0], [0], [1], [0, 0, 1, 1], [], []>} : vector<8x64xbf16>, vector<64x32xbf16>, vector<8x32xf32> -> vector<8x32xf32>
    %c0_41 = arith.constant 0 : index
    %c0_42 = arith.constant 0 : index
    %81 = vector.load %arg13[%c0_41, %c0_42] : memref<1x32xf32, #tpu.memory_space<vmem>>, vector<1x32xf32>
    %82 = vector.broadcast %81 : vector<1x32xf32> to vector<8x32xf32>
    %83 = arith.addf %80, %82 : vector<8x32xf32>
    %84 = arith.addf %69, %83 : vector<8x32xf32>
    %c0_43 = arith.constant 0 : index
    %c0_44 = arith.constant 0 : index
    %85 = vector.load %arg14[%c0_43, %c0_44] : memref<1x32xf32, #tpu.memory_space<vmem>>, vector<1x32xf32>
    %c0_45 = arith.constant 0 : index
    %c0_46 = arith.constant 0 : index
    %86 = vector.load %arg15[%c0_45, %c0_46] : memref<1x32xf32, #tpu.memory_space<vmem>>, vector<1x32xf32>
    %cst_47 = arith.constant dense<0.000000e+00> : vector<8xf32>
    %87 = vector.multi_reduction <add>, %84, %cst_47 [1] : vector<8x32xf32> to vector<8xf32>
    %88 = vector.shape_cast %87 : vector<8xf32> to vector<8x1xf32>
    %cst_48 = arith.constant 3.200000e+01 : f32
    %89 = vector.broadcast %cst_48 : f32 to vector<8x1xf32>
    %90 = arith.divf %88, %89 : vector<8x1xf32>
    %91 = vector.broadcast %90 : vector<8x1xf32> to vector<8x32xf32>
    %92 = arith.subf %84, %91 : vector<8x32xf32>
    %93 = arith.mulf %92, %92 : vector<8x32xf32>
    %cst_49 = arith.constant dense<0.000000e+00> : vector<8xf32>
    %94 = vector.multi_reduction <add>, %93, %cst_49 [1] : vector<8x32xf32> to vector<8xf32>
    %95 = vector.shape_cast %94 : vector<8xf32> to vector<8x1xf32>
    %cst_50 = arith.constant 3.200000e+01 : f32
    %96 = vector.broadcast %cst_50 : f32 to vector<8x1xf32>
    %97 = arith.divf %95, %96 : vector<8x1xf32>
    %98 = vector.broadcast %90 : vector<8x1xf32> to vector<8x32xf32>
    %99 = arith.subf %84, %98 : vector<8x32xf32>
    %cst_51 = arith.constant 9.99999974E-6 : f32
    %100 = vector.broadcast %cst_51 : f32 to vector<8x1xf32>
    %101 = arith.addf %97, %100 : vector<8x1xf32>
    %102 = math.rsqrt %101 : vector<8x1xf32>
    %103 = vector.broadcast %102 : vector<8x1xf32> to vector<8x32xf32>
    %104 = arith.mulf %99, %103 : vector<8x32xf32>
    %105 = vector.broadcast %85 : vector<1x32xf32> to vector<8x32xf32>
    %106 = arith.mulf %104, %105 : vector<8x32xf32>
    %107 = vector.broadcast %86 : vector<1x32xf32> to vector<8x32xf32>
    %108 = arith.addf %106, %107 : vector<8x32xf32>
    %c0_52 = arith.constant 0 : index
    %c0_53 = arith.constant 0 : index
    %109 = vector.load %arg17[%c0_52, %c0_53] : memref<8x32xf32, #tpu.memory_space<vmem>>, vector<8x32xf32>
    tpu.vector_store %arg17[%c0_52, %c0_53], %108 {strides = array<i32>} : memref<8x32xf32, #tpu.memory_space<vmem>>, vector<8x32xf32>,
    %c1_i32 = arith.constant 1 : i32
    %110 = arith.cmpi eq, %arg1, %c1_i32 : i32
    %111 = arith.extui %110 : i1 to i32
    %c0_i32_54 = arith.constant 0 : i32
    %112 = arith.cmpi ne, %111, %c0_i32_54 : i32
    scf.if %112 {
      %c0_55 = arith.constant 0 : index
      %c0_56 = arith.constant 0 : index
      %c0_57 = arith.constant 0 : index
      %113 = vector.load %arg16[%c0_55, %c0_56, %c0_57] : memref<1x8x32xf32, #tpu.memory_space<vmem>>, vector<1x8x32xf32>
      %114 = vector.shape_cast %113 : vector<1x8x32xf32> to vector<8x32xf32>
      %115 = vector.shape_cast %108 : vector<8x32xf32> to vector<1x8x32xf32>
      tpu.vector_store %arg16[%c0_55, %c0_56, %c0_57], %115 {strides = array<i32>} : memref<1x8x32xf32, #tpu.memory_space<vmem>>, vector<1x8x32xf32>,
    } else {
    }
    return
  }
  func.func @transform_0(%arg0: i32, %arg1: i32) -> (i32, i32, i32) {
    %c0_i32 = arith.constant 0 : i32
    %c0_i32_0 = arith.constant 0 : i32
    %c0_i32_1 = arith.constant 0 : i32
    return %arg0, %c0_i32, %c0_i32_0 : i32, i32, i32
  }
  func.func @transform_1(%arg0: i32, %arg1: i32) -> (i32, i32, i32) {
    %c0_i32 = arith.constant 0 : i32
    %c0_i32_0 = arith.constant 0 : i32
    %c0_i32_1 = arith.constant 0 : i32
    return %arg0, %c0_i32, %c0_i32_0 : i32, i32, i32
  }
  func.func @transform_2(%arg0: i32, %arg1: i32) -> (i32, i32, i32) {
    %c0_i32 = arith.constant 0 : i32
    %c0_i32_0 = arith.constant 0 : i32
    %c0_i32_1 = arith.constant 0 : i32
    %c0_i32_2 = arith.constant 0 : i32
    return %c0_i32, %c0_i32_0, %c0_i32_1 : i32, i32, i32
  }
  func.func @transform_3(%arg0: i32, %arg1: i32) -> (i32, i32, i32) {
    %c0_i32 = arith.constant 0 : i32
    %c0_i32_0 = arith.constant 0 : i32
    %c0_i32_1 = arith.constant 0 : i32
    %c0_i32_2 = arith.constant 0 : i32
    return %c0_i32, %c0_i32_0, %c0_i32_1 : i32, i32, i32
  }
  func.func @transform_4(%arg0: i32, %arg1: i32) -> (i32, i32, i32) {
    %c0_i32 = arith.constant 0 : i32
    %c0_i32_0 = arith.constant 0 : i32
    %c0_i32_1 = arith.constant 0 : i32
    %c0_i32_2 = arith.constant 0 : i32
    return %c0_i32, %c0_i32_0, %c0_i32_1 : i32, i32, i32
  }
  func.func @transform_5(%arg0: i32, %arg1: i32) -> (i32, i32) {
    %c0_i32 = arith.constant 0 : i32
    %c0_i32_0 = arith.constant 0 : i32
    %c0_i32_1 = arith.constant 0 : i32
    return %c0_i32, %c0_i32_0 : i32, i32
  }
  func.func @transform_6(%arg0: i32, %arg1: i32) -> (i32, i32) {
    %c0_i32 = arith.constant 0 : i32
    %c0_i32_0 = arith.constant 0 : i32
    %c0_i32_1 = arith.constant 0 : i32
    return %c0_i32, %c0_i32_0 : i32, i32
  }
  func.func @transform_7(%arg0: i32, %arg1: i32) -> (i32, i32) {
    %c0_i32 = arith.constant 0 : i32
    %c0_i32_0 = arith.constant 0 : i32
    %c0_i32_1 = arith.constant 0 : i32
    return %c0_i32, %c0_i32_0 : i32, i32
  }
  func.func @transform_8(%arg0: i32, %arg1: i32) -> (i32, i32) {
    %c0_i32 = arith.constant 0 : i32
    %c0_i32_0 = arith.constant 0 : i32
    %c0_i32_1 = arith.constant 0 : i32
    return %c0_i32, %c0_i32_0 : i32, i32
  }
  func.func @transform_9(%arg0: i32, %arg1: i32) -> (i32, i32) {
    %c0_i32 = arith.constant 0 : i32
    %c0_i32_0 = arith.constant 0 : i32
    %c0_i32_1 = arith.constant 0 : i32
    return %c0_i32, %c0_i32_0 : i32, i32
  }
  func.func @transform_10(%arg0: i32, %arg1: i32) -> (i32, i32) {
    %c0_i32 = arith.constant 0 : i32
    %c0_i32_0 = arith.constant 0 : i32
    %c0_i32_1 = arith.constant 0 : i32
    return %c0_i32, %c0_i32_0 : i32, i32
  }
  func.func @transform_11(%arg0: i32, %arg1: i32) -> (i32, i32) {
    %c0_i32 = arith.constant 0 : i32
    %c0_i32_0 = arith.constant 0 : i32
    %c0_i32_1 = arith.constant 0 : i32
    return %c0_i32, %c0_i32_0 : i32, i32
  }
  func.func @transform_12(%arg0: i32, %arg1: i32) -> (i32, i32) {
    %c0_i32 = arith.constant 0 : i32
    %c0_i32_0 = arith.constant 0 : i32
    %c0_i32_1 = arith.constant 0 : i32
    return %c0_i32, %c0_i32_0 : i32, i32
  }
  func.func @transform_13(%arg0: i32, %arg1: i32) -> (i32, i32) {
    %c0_i32 = arith.constant 0 : i32
    %c0_i32_0 = arith.constant 0 : i32
    %c0_i32_1 = arith.constant 0 : i32
    return %c0_i32, %c0_i32_0 : i32, i32
  }
  func.func @transform_14(%arg0: i32, %arg1: i32) -> (i32, i32, i32) {
    %c0_i32 = arith.constant 0 : i32
    %c0_i32_0 = arith.constant 0 : i32
    %c0_i32_1 = arith.constant 0 : i32
    return %arg0, %c0_i32, %c0_i32_0 : i32, i32, i32
  }
}

</mosaic_0001>

<bundles_post_ra>
// kernel: tpu_custom_call.1
= control target key start
LH: loop header
LB: loop body
LE: loop exit
PB: predicated region body
PF: predicated region fallthrough
CT: control target
= control target key end

     0   :  { %19 = vsyncpa [#allocation4], 0  ;;  %s2617_s0 = inlined_call_operand.vmem [shape: f32[2,8,32], index: 0, kind: input, shape index: {}]   ;;  %s2618_s1 = inlined_call_operand.vmem [shape: f32[2,1,8], index: 1, kind: input, shape index: {}]   ;;  %s2619_s2 = inlined_call_operand.vmem [shape: bf16[4,32,24], index: 2, kind: input, shape index: {}]   ;;  %s2620_s3 = inlined_call_operand.vmem [shape: f32[4,1,24], index: 3, kind: input, shape index: {}]   ;;  %s2621_s4 = inlined_call_operand.vmem [shape: bf16[4,8,32], index: 4, kind: input, shape index: {}]   ;;  %s2622_s5 = inlined_call_operand.vmem [shape: f32[1,32], index: 5, kind: input, shape index: {}]   ;;  %s2623_s6 = inlined_call_operand.vmem [shape: f32[1,32], index: 6, kind: input, shape index: {}]   ;;  %s2624_s7 = inlined_call_operand.vmem [shape: f32[1,32], index: 7, kind: input, shape index: {}]   ;;  %s2625_s8 = inlined_call_operand.vmem [shape: bf16[32,64], index: 8, kind: input, shape index: {}]   ;;  %s2626_s9 = inlined_call_operand.vmem [shape: f32[1,64], index: 9, kind: input, shape index: {}]   ;;  %s2627_s10 = inlined_call_operand.vmem [shape: bf16[64,32], index: 10, kind: input, shape index: {}]   ;;  %s2628_s11 = inlined_call_operand.vmem [shape: f32[1,32], index: 11, kind: input, shape index: {}]   ;;  %s2629_s12 = inlined_call_operand.vmem [shape: f32[1,32], index: 12, kind: input, shape index: {}]   ;;  %s2630_s13 = inlined_call_operand.vmem [shape: f32[1,32], index: 13, kind: input, shape index: {}]   ;;  %s2631_s14 = inlined_call_operand.hbm [shape: f32[2,8,32], index: 14, kind: output, shape index: {}]  }
   0x1   :  { %21 = vsyncpa [#allocation4 + $0x1], 0  ;;  %s2241_s29 = smov 0   ;;  %s2243_s30 = smov 0  }
   0x2   :  { %s2245_s15 = smov 0   ;;  %s2247_s16 = smov 0  }
   0x3   :  { %s2249_s17 = smov 0   ;;  %s2251_s18 = smov 0  }
   0x4   :  { %s2253_s19 = smov 0   ;;  %s2255_s20 = smov 0  }
   0x5 LB: > { %2641 = sst [smem:[#allocation6_spill]] %s2131_s29  ;;  %s1731_s21 = sadd.s32 4294967295, %s2159_s20   ;;  %s2159_s20 = sphi %s2255_s20, %s27_s20   ;;  %s2155_s19 = sphi %s2253_s19, %s2661_s19   ;;  %s2151_s18 = sphi %s2251_s18, %s2660_s18   ;;  %s2147_s17 = sphi %s2249_s17, %s2664_s17   ;;  %s2143_s16 = sphi %s2247_s16, %s2658_s16   ;;  %s2139_s15 = sphi %s2245_s15, %s2657_s15   ;;  %s2135_s30 = sphi %s2243_s30, %s2663_s30   ;;  %s2131_s29 = sphi %s2241_s29, %s2662_s29  }
   0x6   : > { %2642 = sst [smem:[#allocation7_spill]] %s2139_s15  ;;  %s1732_s22 = sadd.s32 4294967294, %s2159_s20  }
   0x7   : > { %2643 = sst [smem:[#allocation8_spill]] %s2151_s18  ;;  %s36_s23 = sadd.s32 1, %s2151_s18 }
   0x8   : > { %2644 = sst [smem:[#allocation9_spill]] %s2155_s19  ;;  %p37_p0 = scmp.ge.s32.totalorder %s36_s23, 2 }
   0x9   : > { %2645 = sst [smem:[#allocation10_spill]] %s2159_s20  ;;  %s39_s24 = sadd.s32 1, %s2155_s19 }
   0xa   : > { %p360_p1 = scmp.ne.s32.totalorder %s2139_s15, %s2135_s30  ;;  %p361_p2 = scmp.eq.s32.totalorder %s1731_s21, 3 }
   0xb   : > { %s2666_s23 = smov (%p37_p0, %s36_s23), 0  ;;  %s2668_s24 = smov (!%p37_p0, %s39_s24), %s2155_s19 }
   0xc   : > { %2646 = sst [smem:[#allocation11_spill]] %s2666_s23  ;;  %p2290_p3 = por %p361_p2, %p360_p1 }
   0xd   : > { %p366_p4 = scmp.ne.s32.totalorder %s2135_s30, %s2131_s29  ;;  %p41_p5 = scmp.ge.s32.totalorder %s2668_s24, 2 }
   0xe   : > { %p367_p6 = scmp.eq.s32.totalorder %s1732_s22, 3  ;;  %p1735_p7 = scmp.ge.s32.totalorder %s2159_s20, 1 }
   0xf   : > { %p434_p8 = scmp.lt.s32.totalorder %s2159_s20, 5  ;;  %s2670_s24 = smov (%p41_p5, %s2668_s24), 0 }
  0x10   : > { %2648 = sst [smem:[#allocation12_spill]] %s2670_s24  ;;  %p2300_p9 = por %p367_p6, %p366_p4 }
  0x11   : > { %p435_p10 = pnand %p1735_p7, %p434_p8  ;;  %s347_s27 = ssub.s32 %s2155_s19, %s2670_s24 }
  0x12   : > { %s2649_s26 = scalar_select %p2300_p9, 1, 0 }
  0x13   : > { %s350_s28 = sadd.s32 1, %s2139_s15  ;;  %p348_p11 = scmp.eq.s32.totalorder %s347_s27, 0 }
  0x14   : > { %2650 = sst [smem:[#allocation13_spill]] %s2649_s26  ;;  %438 = sbr.rel (%p435_p10) target bundleno = 2449 (0x991), region = 76 }
  0x15   : > { %s2308_s21 = scalar_select %p348_p11, %s2139_s15, %s350_s28  }
  0x16   : > { %s2638_s22 = sand.u32 (!%p435_p10), 1, %s2135_s30   ;;  %p482_p12 = scmp.lt.s32.totalorder (!%p435_p10), %s2147_s17, 1 }
  0x17   : > { %2651 = sst [smem:[#allocation14_spill]] %s2308_s21  ;;  %s2314_s23 = sshll.u32 (!%p435_p10), %s2638_s22, 3 }
  0x18   : > { %s481_s29 = scalar_lea.vmem (!%p435_p10), [#allocation3], %s2314_s23  ;;  %p1738_p13 = scmp.ne.s32.totalorder (!%p435_p10), %s2143_s16, 0 }
  0x1b   : > { %s2317_s18 = scalar_select %p482_p12, %s2147_s17, 1 }
  0x1c   : > { %493 = sbr.rel (%p1738_p13) target bundleno = 35 (0x23), region = 80  ;;  %vm495_vm0 = vcmask (!%p1738_p13), 261120  }
  0x1d   : > { %s1737_s24 = sshll.u32 %s2317_s18, 3  ;;  %s488_s28 = scalar_lea.vmem %s2618_s1, %s2317_s18 }
  0x1e   : > { %s485_s26 = scalar_lea.vmem %s2617_s0, %s1737_s24 }
  0x1f   : > { %v494_v0 = vld [vmem:[%s485_s26] sm:$0xff] (!%p1738_p13) }
  0x20   : > { %496 = vst.msk [vmem:[#allocation2] sm:$0xff] (!%p1738_p13), %vm495_vm0, %v494_v0 }
  0x23 PF: > { %v2031_v1 = vld [vmem:[%s2619_s2] sm:$0xff]   ;;  %v2161_v2 = vmov 0.0   ;;  %v2032_v3 = vld [vmem:[%s2619_s2 + $0x10] sm:$0xff]   ;;  %v2033_v4 = vld [vmem:[%s2619_s2 + $0x8] sm:$0xff]   ;;  %vm2162_vm1 = vmmov 0   ;;  %vm556_vm2 = vcmask 261120  }
  0x24   : > { %1832 = vmatprep.subr.bf16.mxu0 %v2161_v2  ;;  %1840 = vmatprep.subr.bf16.mxu1 %v2161_v2  ;;  %v2034_v5 = vld [vmem:[%s2619_s2 + $0x18] sm:$0xff]   ;;  %v2035_v8 = vld [vmem:[%s2619_s2 + $0x20] sm:$0xff]   ;;  %v2036_v9 = vld [vmem:[%s2619_s2 + $0x30] sm:$0xff]   ;;  %s2163_s24 = smov 120   ;;  %vm763_vm3 = vcmask 64512   ;;  %s2164_s18 = smov 112  }
  0x25   : > { %1833 = vmatpush3.bf16.msra.mxu0 %v2031_v1  ;;  %1836 = vmatprep.mubr.msk.bf16.mxu0 %vm2162_vm1, %v2161_v2  ;;  %v2037_v10 = vld [vmem:[%s2619_s2 + $0x28] sm:$0xff]   ;;  %v2038_v11 = vld [vmem:[%s2619_s2 + $0x38] sm:$0xff]   ;;  %v1739_v12 = vld [vmem:[%s2620_s3] ss:$0 sm:$0xff]  ;;  %vm1024_vm4 = vcmask 1043456   ;;  %vm1558_vm5 = vcmask 523264  }
  0x26   : > { %1841 = vmatpush3.bf16.msra.mxu1 %v2032_v3  ;;  %1834 = vmatprep.subr.bf16.mxu0 %v2161_v2  ;;  %v1740_v13 = vld [vmem:[%s2620_s3 + $0x1] ss:$0 sm:$0xff]  ;;  %v1741_v26 = vld [vmem:[%s2620_s3 + $0x2] ss:$0 sm:$0xff]  ;;  %v1742_v27 = vld [vmem:[%s2620_s3 + $0x3] ss:$0 sm:$0xff] }
  0x27   : > { %1842 = vmatprep.subr.bf16.mxu1 %v2161_v2  ;;  %v2347_v6 = vld [vmem:[#allocation2] sm:$0xff]  ;;  %1844 = vmatprep.mubr.msk.bf16.mxu1 %vm2162_vm1, %v2161_v2  ;;  %p1783_p0 = scmp.ne.s32.totalorder %s2143_s16, 1 }
  0x28   : > { %v499_v7 = vpack.c.bf16 %v2347_v6, %v2347_v6  ;;  %v1759_v49 = vld [vmem:[%s488_s28] ss:$0 sm:$0xff] }
  0x29   : > { %1835 = vmatpush3.bf16.msra.mxu0 %v2033_v4 }
  0x2a   : > { %1843 = vmatpush3.bf16.msra.mxu1 %v2034_v5  ;;  %1848 = vmatprep.subr.bf16.mxu0 %v2161_v2 }
  0x2b   : > { %1856 = vmatprep.subr.bf16.mxu1 %v2161_v2 }
  0x2c   : > { %1837 = vmatmul.mubr.msk.bf16.vlgmr.msra.gmra.mrb[0].mxu0 %vm556_vm2, %v499_v7 }
  0x2d   : > { %1845 = vmatmul.mubr.msk.bf16.vlgmr.msra.gmra.mrb[0].mxu1 %vm556_vm2, %v499_v7  ;;  %1849 = vmatpush3.bf16.msra.mxu0 %v2035_v8 }
  0x2e   : > { %1857 = vmatpush3.bf16.msra.mxu1 %v2036_v9  ;;  %1850 = vmatprep.subr.bf16.mxu0 %v2161_v2 }
  0x2f   : > { %1858 = vmatprep.subr.bf16.mxu1 %v2161_v2  ;;  %1852 = vmatprep.mubr.msk.bf16.mxu0 %vm2162_vm1, %v2161_v2 }
  0x30   : > { %1860 = vmatprep.mubr.msk.bf16.mxu1 %vm2162_vm1, %v2161_v2 }
  0x31   : > { %1851 = vmatpush3.bf16.msra.mxu0 %v2037_v10 }
  0x32   : > { %1859 = vmatpush3.bf16.msra.mxu1 %v2038_v11  ;;  %1864 = vmatprep.subr.bf16.mxu0 %v2161_v2 }
  0x33   : > { %1870 = vmatprep.subr.bf16.mxu1 %v2161_v2 }
  0x34   : > { %1853 = vmatmul.mubr.msk.bf16.vlgmr.msra.gmra.mrb[4].mxu0 %vm556_vm2, %v499_v7 }
  0x35   : > { %1861 = vmatmul.mubr.msk.bf16.vlgmr.msra.gmra.mrb[4].mxu1 %vm556_vm2, %v499_v7  ;;  %1866 = vmatprep.mubr.msk.bf16.mxu0 %vm2162_vm1, %v2161_v2 }
  0x36   : > { %1872 = vmatprep.mubr.msk.bf16.mxu1 %vm2162_vm1, %v2161_v2 }
  0xff   : > { %v594_v14 = vpop.f32.mrb[0].mxu0 }
 0x100   : > { %v595_v15 = vadd.f32 %v1739_v12, %v594_v14  ;;  %v1838_v16 = vpop.f32.mrb[1].mxu0  ;;  %v646_v17 = vpop.f32.mrb[0].mxu1 }
 0x101   : > { %v647_v18 = vadd.f32 %v1740_v13, %v646_v17  ;;  %v597_v19 = vpop.f32.mrb[2].mxu0  ;;  %v1846_v20 = vpop.f32.mrb[1].mxu1 }
 0x102   : > { %v2389_v21 = vpack.c.bf16 %v595_v15, %v595_v15  ;;  %v1839_v22 = vpop.f32.mrb[3].mxu0  ;;  %v649_v23 = vpop.f32.mrb[2].mxu1 }
 0x103   : > { %v1847_v24 = vpop.f32.mrb[3].mxu1  ;;  %v2391_v25 = vpack.c.bf16 %v647_v18, %v647_v18 }
 0x104   : > { %761 = vrot.lane.b32.xlu0 %v2389_v21, %s2163_s24 }
 0x107   : > { %v698_v28 = vpop.f32.mrb[4].mxu0 }
 0x108   : > { %v699_v29 = vadd.f32 %v1741_v26, %v698_v28  ;;  %v750_v30 = vpop.f32.mrb[4].mxu1  ;;  %811 = vrot.lane.b32.xlu0 %v2391_v25, %s2163_s24  ;;  %v1854_v31 = vpop.f32.mrb[5].mxu0 }
 0x109   : > { %v751_v32 = vadd.f32 %v1742_v27, %v750_v30  ;;  %v701_v33 = vpop.f32.mrb[6].mxu0  ;;  %v1862_v34 = vpop.f32.mrb[5].mxu1 }
 0x10a   : > { %v2401_v35 = vpack.c.bf16 %v699_v29, %v699_v29  ;;  %v1855_v36 = vpop.f32.mrb[7].mxu0  ;;  %v753_v37 = vpop.f32.mrb[6].mxu1 }
 0x10b   : > { %v1863_v38 = vpop.f32.mrb[7].mxu1  ;;  %v2403_v39 = vpack.c.bf16 %v751_v32, %v751_v32 }
 0x10c   : > { %860 = vrot.lane.b32.xlu1 %v2401_v35, %s2163_s24 }
 0x110   : > { %909 = vrot.lane.b32.xlu1 %v2403_v39, %s2163_s24 }
 0x176   : > { %v762_v40 = vpop.permute.xlu0 %761 }
 0x177   : > { %v768_v41 = vsel %vm763_vm3, %v762_v40, 0 }
 0x178   : > { %1865 = vmatpush3.bf16.xpose.msra.mxu0 %v768_v41 }
 0x179   : > { %1876 = vmatprep.subr.bf16.mxu0 %v2161_v2 }
 0x17a   : > { %v812_v42 = vpop.permute.xlu0 %811 }
 0x17b   : > { %v817_v43 = vsel %vm763_vm3, %v812_v42, 0 }
 0x17c   : > { %1871 = vmatpush3.bf16.xpose.msra.mxu1 %v817_v43 }
 0x17d   : > { %1882 = vmatprep.subr.bf16.mxu1 %v2161_v2 }
 0x17e   : > { %v861_v44 = vpop.permute.xlu1 %860 }
 0x17f   : > { %v866_v45 = vsel %vm763_vm3, %v861_v44, 0  ;;  %1867 = vmatmul.mubr.msk.bf16.vlgmr.msra.gmra.mrb[8].mxu0 %vm763_vm3, %v2389_v21 }
 0x180   : > { %1877 = vmatpush3.bf16.xpose.msra.mxu0 %v866_v45  ;;  %1878 = vmatprep.mubr.msk.bf16.mxu0 %vm2162_vm1, %v2161_v2 }
 0x181   : > { %1888 = vmatprep.subr.bf16.mxu0 %v2161_v2 }
 0x182   : > { %v910_v46 = vpop.permute.xlu1 %909 }
 0x183   : > { %v915_v47 = vsel %vm763_vm3, %v910_v46, 0  ;;  %1873 = vmatmul.mubr.msk.bf16.vlgmr.msra.gmra.mrb[8].mxu1 %vm763_vm3, %v2391_v25 }
 0x184   : > { %1883 = vmatpush3.bf16.xpose.msra.mxu1 %v915_v47  ;;  %1884 = vmatprep.mubr.msk.bf16.mxu1 %vm2162_vm1, %v2161_v2 }
 0x185   : > { %1894 = vmatprep.subr.bf16.mxu1 %v2161_v2 }
 0x187   : > { %1879 = vmatmul.mubr.msk.bf16.vlgmr.msra.gmra.mrb[12].mxu0 %vm763_vm3, %v2401_v35 }
 0x188   : > { %1890 = vmatprep.mubr.msk.bf16.mxu0 %vm2162_vm1, %v2161_v2 }
 0x18b   : > { %1885 = vmatmul.mubr.msk.bf16.vlgmr.msra.gmra.mrb[12].mxu1 %vm763_vm3, %v2403_v39 }
 0x18c   : > { %1896 = vmatprep.mubr.msk.bf16.mxu1 %vm2162_vm1, %v2161_v2 }
 0x252   : > { %v804_v48 = vpop.f32.mrb[8].mxu0 }
 0x253   : > { %v957_v50 = vmul.f32 0.35355338, %v804_v48  ;;  %v1868_v51 = vpop.f32.mrb[9].mxu0 }
 0x254   : > { %v807_v52 = vpop.f32.mrb[10].mxu0 }
 0x255   : > { %v1869_v53 = vpop.f32.mrb[11].mxu0  ;;  %v967_v54 = vadd.f32 %v1759_v49, %v957_v50 }
 0x256   : > { %v853_v55 = vpop.f32.mrb[8].mxu1 }
 0x257   : > { %v958_v56 = vmul.f32 0.35355338, %v853_v55  ;;  %v1874_v57 = vpop.f32.mrb[9].mxu1  ;;  %v971_v58 = vsel %vm763_vm3, %v967_v54, -inf }
 0x258   : > { %v856_v59 = vpop.f32.mrb[10].mxu1  ;;  %972 = vmax.xlane.f32.xlu0 %v971_v58 }
 0x259   : > { %v1875_v60 = vpop.f32.mrb[11].mxu1  ;;  %v968_v61 = vadd.f32 %v1759_v49, %v958_v56  ;;  %v1216_v59 = vld [vmem:[%s2621_s4] sm:$0xf] }
 0x25a   : > { %v902_v62 = vpop.f32.mrb[12].mxu0  ;;  %v1224_v60 = vsel %vm1024_vm4, %v1216_v59, 0  ;;  %v2042_v59 = vld [vmem:[%s2627_s10 + $0x8] sm:$0xff]  }
 0x25b   : > { %v959_v63 = vmul.f32 0.35355338, %v902_v62  ;;  %v1880_v0 = vpop.f32.mrb[13].mxu0  ;;  %v974_v1 = vsel %vm763_vm3, %v968_v61, -inf }
 0x25c   : > { %975 = vmax.xlane.f32.xlu1 %v974_v1  ;;  %v905_v3 = vpop.f32.mrb[14].mxu0 }
 0x25d   : > { %v1881_v4 = vpop.f32.mrb[15].mxu0  ;;  %v969_v5 = vadd.f32 %v1759_v49, %v959_v63  ;;  %v1218_v63 = vld [vmem:[%s2621_s4 + $0x8] sm:$0xf] }
 0x25e   : > { %v951_v7 = vpop.f32.mrb[12].mxu1  ;;  %v1316_v4 = vsel %vm1024_vm4, %v1218_v63, 0 }
 0x25f   : > { %v960_v8 = vmul.f32 0.35355338, %v951_v7  ;;  %v1886_v9 = vpop.f32.mrb[13].mxu1  ;;  %v977_v10 = vsel %vm763_vm3, %v969_v5, -inf }
 0x260   : > { %v954_v11 = vpop.f32.mrb[14].mxu1  ;;  %978 = vmax.xlane.f32.xlu0 %v977_v10 }
 0x261   : > { %v1887_v12 = vpop.f32.mrb[15].mxu1  ;;  %v970_v13 = vadd.f32 %v1759_v49, %v960_v8  ;;  %v1219_v8 = vld [vmem:[%s2621_s4 + $0xc] sm:$0xf] }
 0x262   : > { %v1362_v12 = vsel %vm1024_vm4, %v1219_v8, 0  ;;  %v2043_v8 = vld [vmem:[%s2627_s10 + $0x10] sm:$0xff]  }
 0x263   : > { %v980_v14 = vsel %vm763_vm3, %v970_v13, -inf }
 0x264   : > { %981 = vmax.xlane.f32.xlu0 %v980_v14 }
 0x26d   : > { %1019 = vrot.lane.b32.xlu1 %v2389_v21, %s2164_s18 }
 0x2e5   : > { %v973_v15 = vpop.xlane.xlu0 %972 }
 0x2e6   : > { %v983_v16 = vsub.f32 %v967_v54, %v973_v15 }
 0x2e8   : > { %v987_v17 = vmul.f32 1.442695, %v983_v16 }
 0x2e9   : > { %v976_v18 = vpop.xlane.xlu1 %975 }
 0x2ea   : > { %2045 = vpow2.f32 %v987_v17  ;;  %v984_v19 = vsub.f32 %v968_v61, %v976_v18  ;;  %v1217_v61 = vld [vmem:[%s2621_s4 + $0x4] sm:$0xf] }
 0x2eb   : > { %v1270_v62 = vsel %vm1024_vm4, %v1217_v61, 0 }
 0x2ec   : > { %v989_v20 = vmul.f32 1.442695, %v984_v19 }
 0x2ed   : > { %v1020_v22 = vpop.permute.xlu1 %1019  ;;  %v979_v23 = vpop.xlane.xlu0 %978 }
 0x2ee   : > { %2047 = vpow2.f32 %v989_v20  ;;  %v1026_v24 = vsel %vm1024_vm4, %v1020_v22, 0  ;;  %v985_v26 = vsub.f32 %v969_v5, %v979_v23 }
 0x2ef   : > { %1889 = vmatpush3.bf16.msra.mxu0 %v1026_v24 }
 0x2f0   : > { %v991_v27 = vmul.f32 1.442695, %v985_v26  ;;  %1900 = vmatprep.subr.bf16.mxu0 %v2161_v2 }
 0x2f1   : > { %v982_v28 = vpop.xlane.xlu0 %981 }
 0x2f2   : > { %2049 = vpow2.f32 %v991_v27  ;;  %v986_v21 = vsub.f32 %v970_v13, %v982_v28 }
 0x2f4   : > { %v2046_v29 = vpop.eup %2045  ;;  %v993_v30 = vmul.f32 1.442695, %v986_v21 }
 0x2f5   : > { %v995_v31 = vsel %vm763_vm3, %v2046_v29, 0.0 }
 0x2f6   : > { %2051 = vpow2.f32 %v993_v30  ;;  %996 = vadd.xlane.f32.xlu1 %v995_v31 }
 0x2f8   : > { %v2048_v32 = vpop.eup %2047 }
 0x2f9   : > { %v998_v33 = vsel %vm763_vm3, %v2048_v32, 0.0 }
 0x2fa   : > { %999 = vadd.xlane.f32.xlu0 %v998_v33 }
 0x2fc   : > { %v2050_v34 = vpop.eup %2049 }
 0x2fd   : > { %v1001_v36 = vsel %vm763_vm3, %v2050_v34, 0.0 }
 0x2fe   : > { %1002 = vadd.xlane.f32.xlu1 %v1001_v36 }
 0x300   : > { %v2052_v37 = vpop.eup %2051 }
 0x301   : > { %v1004_v38 = vsel %vm763_vm3, %v2052_v37, 0.0 }
 0x302   : > { %1005 = vadd.xlane.f32.xlu0 %v1004_v38 }
 0x30f   : > { %1116 = vrot.lane.b32.xlu1 %v2401_v35, %s2164_s18 }
 0x313   : > { %1164 = vrot.lane.b32.xlu1 %v2403_v39, %s2164_s18 }
 0x318   : > { %1068 = vrot.lane.b32.xlu0 %v2391_v25, %s2164_s18 }
 0x383   : > { %v997_v40 = vpop.xlane.xlu1 %996 }
 0x384   : > { %2053 = vrcp.f32 %v997_v40 }
 0x387   : > { %v1000_v41 = vpop.xlane.xlu0 %999 }
 0x388   : > { %2055 = vrcp.f32 %v1000_v41 }
 0x38b   : > { %v1003_v42 = vpop.xlane.xlu1 %1002 }
 0x38c   : > { %2057 = vrcp.f32 %v1003_v42 }
 0x38e   : > { %v2054_v43 = vpop.eup %2053 }
 0x38f   : > { %v1011_v44 = vmul.f32 %v2054_v43, %v2046_v29  ;;  %v1117_v45 = vpop.permute.xlu1 %1116  ;;  %v1006_v46 = vpop.xlane.xlu0 %1005 }
 0x390   : > { %2059 = vrcp.f32 %v1006_v46  ;;  %v1122_v49 = vsel %vm1024_vm4, %v1117_v45, 0 }
 0x391   : > { %v1015_v47 = vpack.c.bf16 %v1011_v44, %v1011_v44 }
 0x392   : > { %v2056_v48 = vpop.eup %2055 }
 0x393   : > { %v1012_v35 = vmul.f32 %v2056_v48, %v2048_v32  ;;  %1891 = vmatmul.mubr.msk.bf16.vlgmr.msra.gmra.mrb[16].mxu0 %vm763_vm3, %v1015_v47  ;;  %v1069_v39 = vpop.permute.xlu0 %1068  ;;  %v1165_v50 = vpop.permute.xlu1 %1164  ;;  %v1768_v47 = vld [vmem:[%s2622_s5] ss:$0 sm:$0xff] }
 0x394   : > { %1901 = vmatpush3.bf16.msra.mxu0 %v1122_v49  ;;  %v1074_v25 = vsel %vm1024_vm4, %v1069_v39, 0  ;;  %1902 = vmatprep.mubr.msk.bf16.mxu0 %vm2162_vm1, %v2161_v2  ;;  %v1170_v54 = vsel %vm1024_vm4, %v1165_v50, 0 }
 0x395   : > { %1895 = vmatpush3.bf16.msra.mxu1 %v1074_v25  ;;  %v1016_v51 = vpack.c.bf16 %v1012_v35, %v1012_v35  ;;  %1912 = vmatprep.subr.bf16.mxu0 %v2161_v2 }
 0x396   : > { %v2058_v52 = vpop.eup %2057  ;;  %1906 = vmatprep.subr.bf16.mxu1 %v2161_v2 }
 0x397   : > { %v1013_v53 = vmul.f32 %v2058_v52, %v2050_v34 }
 0x398   : > { %1897 = vmatmul.mubr.msk.bf16.vlgmr.msra.gmra.mrb[16].mxu1 %vm763_vm3, %v1016_v51 }
 0x399   : > { %1907 = vmatpush3.bf16.msra.mxu1 %v1170_v54  ;;  %v1017_v55 = vpack.c.bf16 %v1013_v53, %v1013_v53  ;;  %1908 = vmatprep.mubr.msk.bf16.mxu1 %vm2162_vm1, %v2161_v2 }
 0x39a   : > { %v2060_v56 = vpop.eup %2059  ;;  %1918 = vmatprep.subr.bf16.mxu1 %v2161_v2 }
 0x39b   : > { %v1014_v57 = vmul.f32 %v2060_v56, %v2052_v37  ;;  %1903 = vmatmul.mubr.msk.bf16.vlgmr.msra.gmra.mrb[20].mxu0 %vm763_vm3, %v1017_v55 }
 0x39c   : > { %1914 = vmatprep.mubr.msk.bf16.mxu0 %vm2162_vm1, %v2161_v2  ;;  %1913 = vmatpush3.bf16.msra.mxu0 %v1224_v60 }
 0x39d   : > { %v1018_v58 = vpack.c.bf16 %v1014_v57, %v1014_v57  ;;  %1924 = vmatprep.subr.bf16.mxu0 %v2161_v2  ;;  %v2039_v57 = vld [vmem:[%s2625_s8] sm:$0xff]  }
 0x3a0   : > { %1909 = vmatmul.mubr.msk.bf16.vlgmr.msra.gmra.mrb[20].mxu1 %vm763_vm3, %v1018_v58  ;;  %v2040_v58 = vld [vmem:[%s2625_s8 + $0x8] sm:$0xff]  }
 0x3a1   : > { %1920 = vmatprep.mubr.msk.bf16.mxu1 %vm2162_vm1, %v2161_v2  ;;  %1919 = vmatpush3.bf16.msra.mxu1 %v1270_v62 }
 0x3a2   : > { %1930 = vmatprep.subr.bf16.mxu1 %v2161_v2 }
 0x466   : > { %v1062_v0 = vpop.f32.mrb[16].mxu0 }
 0x467   : > { %v1212_v1 = vpack.c.bf16 %v1062_v0, %v1062_v0  ;;  %v1892_v3 = vpop.f32.mrb[17].mxu0  ;;  %v1769_v0 = vld [vmem:[%s2623_s6] ss:$0 sm:$0xff] }
 0x468   : > { %v1065_v5 = vpop.f32.mrb[18].mxu0  ;;  %v1770_v3 = vld [vmem:[%s2624_s7] ss:$0 sm:$0xff] }
 0x469   : > { %v1893_v7 = vpop.f32.mrb[19].mxu0  ;;  %1915 = vmatmul.mubr.msk.bf16.vlgmr.msra.gmra.mrb[24].mxu0 %vm763_vm3, %v1212_v1 }
 0x46a   : > { %1925 = vmatpush3.bf16.msra.mxu0 %v1316_v4  ;;  %1926 = vmatprep.mubr.msk.bf16.mxu0 %vm2162_vm1, %v2161_v2 }
 0x46b   : > { %v1110_v9 = vpop.f32.mrb[16].mxu1  ;;  %1936 = vmatprep.subr.bf16.mxu0 %v2161_v2 }
 0x46c   : > { %v1213_v10 = vpack.c.bf16 %v1110_v9, %v1110_v9  ;;  %v1898_v11 = vpop.f32.mrb[17].mxu1  ;;  %v2044_v9 = vld [vmem:[%s2627_s10 + $0x18] sm:$0xff]  }
 0x46d   : > { %v1113_v13 = vpop.f32.mrb[18].mxu1 }
 0x46e   : > { %v1899_v14 = vpop.f32.mrb[19].mxu1  ;;  %v1158_v15 = vpop.f32.mrb[20].mxu0  ;;  %1921 = vmatmul.mubr.msk.bf16.vlgmr.msra.gmra.mrb[24].mxu1 %vm763_vm3, %v1213_v10  ;;  %v1771_v10 = vld [vmem:[%s2626_s9] ss:$0 sm:$0xff] }
 0x46f   : > { %v1214_v16 = vpack.c.bf16 %v1158_v15, %v1158_v15  ;;  %v1904_v17 = vpop.f32.mrb[21].mxu0  ;;  %1931 = vmatpush3.bf16.msra.mxu1 %v1362_v12  ;;  %1932 = vmatprep.mubr.msk.bf16.mxu1 %vm2162_vm1, %v2161_v2 }
 0x470   : > { %v1161_v18 = vpop.f32.mrb[22].mxu0  ;;  %1944 = vmatprep.subr.bf16.mxu1 %v2161_v2 }
 0x471   : > { %v1905_v19 = vpop.f32.mrb[23].mxu0  ;;  %1927 = vmatmul.mubr.msk.bf16.vlgmr.msra.gmra.mrb[28].mxu0 %vm763_vm3, %v1214_v16 }
 0x472   : > { %1940 = vmatprep.mubr.msk.bf16.mxu0 %vm2162_vm1, %v2161_v2  ;;  %1937 = vmatpush3.bf16.msra.mxu0 %v2039_v57 }
 0x473   : > { %v1206_v20 = vpop.f32.mrb[20].mxu1  ;;  %1938 = vmatprep.subr.bf16.mxu0 %v2161_v2 }
 0x474   : > { %v1215_v22 = vpack.c.bf16 %v1206_v20, %v1206_v20  ;;  %v1910_v23 = vpop.f32.mrb[21].mxu1 }
 0x475   : > { %v1209_v24 = vpop.f32.mrb[22].mxu1 }
 0x476   : > { %v1911_v26 = vpop.f32.mrb[23].mxu1  ;;  %1933 = vmatmul.mubr.msk.bf16.vlgmr.msra.gmra.mrb[28].mxu1 %vm763_vm3, %v1215_v22  ;;  %1939 = vmatpush3.bf16.msra.mxu0 %v2040_v58 }
 0x477   : > { %1952 = vmatprep.mubr.msk.bf16.mxu1 %vm2162_vm1, %v2161_v2 }
 0x53c   : > { %v1260_v27 = vpop.f32.mrb[24].mxu0 }
 0x53d   : > { %v1916_v28 = vpop.f32.mrb[25].mxu0  ;;  %v1404_v31 = vsel %vm556_vm2, %v1260_v27, 0.0 }
 0x53e   : > { %v1263_v21 = vpop.f32.mrb[26].mxu0 }
 0x53f   : > { %v1917_v29 = vpop.f32.mrb[27].mxu0 }
 0x541   : > { %v1306_v30 = vpop.f32.mrb[24].mxu1 }
 0x542   : > { %v1405_v32 = vsel %vm556_vm2, %v1306_v30, 0.0  ;;  %v1922_v33 = vpop.f32.mrb[25].mxu1 }
 0x543   : > { %v1406_v34 = vadd.f32 %v1405_v32, %v1404_v31  ;;  %v1309_v36 = vpop.f32.mrb[26].mxu1 }
 0x544   : > { %v1923_v37 = vpop.f32.mrb[27].mxu1  ;;  %v1352_v38 = vpop.f32.mrb[28].mxu0  ;;  %v1781_v36 = vld [vmem:[%s2629_s12] ss:$0 sm:$0xff] }
 0x545   : > { %v1407_v40 = vsel %vm556_vm2, %v1352_v38, 0.0  ;;  %v1928_v41 = vpop.f32.mrb[29].mxu0  ;;  %v1782_v38 = vld [vmem:[%s2630_s13] ss:$0 sm:$0xff] }
 0x546   : > { %v1408_v42 = vadd.f32 %v1407_v40, %v1406_v34  ;;  %v1355_v43 = vpop.f32.mrb[30].mxu0 }
 0x547   : > { %v1929_v44 = vpop.f32.mrb[31].mxu0 }
 0x549   : > { %v1398_v45 = vpop.f32.mrb[28].mxu1 }
 0x54a   : > { %v1409_v46 = vsel %vm556_vm2, %v1398_v45, 0.0  ;;  %v1934_v48 = vpop.f32.mrb[29].mxu1 }
 0x54b   : > { %v1410_v35 = vadd.f32 %v1409_v46, %v1408_v42  ;;  %v1401_v49 = vpop.f32.mrb[30].mxu1 }
 0x54c   : > { %v1935_v39 = vpop.f32.mrb[31].mxu1 }
 0x54d   : > { %v1418_v25 = vadd.f32 %v1768_v47, %v1410_v35 }
 0x54f   : > { %v1419_v50 = vadd.f32 %v1418_v25, %v2347_v6  ;;  %v2041_v6 = vld [vmem:[%s2627_s10] sm:$0xff]  }
 0x550   : > { %1945 = vmatpush3.bf16.msra.mxu1 %v2041_v6 }
 0x551   : > { %v1422_v51 = vsel %vm556_vm2, %v1419_v50, 0.0  ;;  %1946 = vmatprep.subr.bf16.mxu1 %v2161_v2 }
 0x552   : > { %1423 = vadd.xlane.f32.xlu0 %v1422_v51 }
 0x554   : > { %1947 = vmatpush3.bf16.msra.mxu1 %v2042_v59 }
 0x555   : > { %1948 = vmatprep.subr.bf16.mxu1 %v2161_v2 }
 0x558   : > { %1949 = vmatpush3.bf16.msra.mxu1 %v2043_v8 }
 0x559   : > { %1950 = vmatprep.subr.bf16.mxu1 %v2161_v2  ;;  %v1775_v2 = vld [vmem:[%s2628_s11] ss:$0 sm:$0xff] }
 0x55c   : > { %1951 = vmatpush3.bf16.msra.mxu1 %v2044_v9 }
 0x5df   : > { %v1424_v52 = vpop.xlane.xlu0 %1423 }
 0x5e0   : > { %v1426_v53 = vmul.f32 0.03125, %v1424_v52 }
 0x5e2   : > { %v1427_v54 = vsub.f32 %v1419_v50, %v1426_v53 }
 0x5e4   : > { %v1428_v55 = vmul.f32 %v1427_v54, %v1427_v54 }
 0x5e6   : > { %v1429_v56 = vsel %vm556_vm2, %v1428_v55, 0.0 }
 0x5e7   : > { %1430 = vadd.xlane.f32.xlu1 %v1429_v56 }
 0x674   : > { %v1431_v60 = vpop.xlane.xlu1 %1430 }
 0x675   : > { %v1432_v61 = vmul.f32 0.03125, %v1431_v60 }
 0x677   : > { %v1433_v62 = vadd.f32 1e-05, %v1432_v61 }
 0x679   : > { %2061 = vrsqrt.f32 %v1433_v62 }
 0x683   : > { %v2062_v63 = vpop.eup %2061 }
 0x684   : > { %v1435_v1 = vmul.f32 %v2062_v63, %v1427_v54 }
 0x686   : > { %v1442_v4 = vmul.f32 %v1769_v0, %v1435_v1 }
 0x688   : > { %v1449_v5 = vadd.f32 %v1770_v3, %v1442_v4 }
 0x68a   : > { %v1450_v7 = vpack.c.bf16 %v1449_v5, %v1449_v5 }
 0x68c   : > { %1941 = vmatmul.mubr.msk.bf16.vlgmr.msra.gmra.mrb[32].mxu0 %vm556_vm2, %v1450_v7 }
 0x75f   : > { %v1511_v11 = vpop.f32.mrb[32].mxu0 }
 0x760   : > { %v1512_v12 = vadd.f32 %v1771_v10, %v1511_v11  ;;  %v1942_v13 = vpop.f32.mrb[33].mxu0 }
 0x761   : > { %v1514_v14 = vpop.f32.mrb[34].mxu0 }
 0x762   : > { %v1517_v15 = vmax.f32 %v1512_v12, 0.0  ;;  %v1943_v16 = vpop.f32.mrb[35].mxu0 }
 0x764   : > { %v1518_v17 = vpack.c.bf16 %v1517_v15, %v1517_v15 }
 0x766   : > { %1953 = vmatmul.mubr.msk.bf16.vlgmr.msra.gmra.mrb[32].mxu1 %vm1558_vm5, %v1518_v17 }
 0x839   : > { %v1596_v18 = vpop.f32.mrb[32].mxu1 }
 0x83a   : > { %v1597_v19 = vadd.f32 %v1775_v2, %v1596_v18  ;;  %v1954_v20 = vpop.f32.mrb[33].mxu1 }
 0x83b   : > { %v1599_v22 = vpop.f32.mrb[34].mxu1 }
 0x83c   : > { %v1955_v23 = vpop.f32.mrb[35].mxu1  ;;  %v1602_v24 = vadd.f32 %v1597_v19, %v1449_v5 }
 0x83e   : > { %v1605_v26 = vsel %vm556_vm2, %v1602_v24, 0.0 }
 0x83f   : > { %1606 = vadd.xlane.f32.xlu0 %v1605_v26 }
 0x8cc   : > { %v1607_v27 = vpop.xlane.xlu0 %1606 }
 0x8cd   : > { %v1608_v28 = vmul.f32 0.03125, %v1607_v27 }
 0x8cf   : > { %v1609_v21 = vsub.f32 %v1602_v24, %v1608_v28 }
 0x8d1   : > { %v1610_v29 = vmul.f32 %v1609_v21, %v1609_v21 }
 0x8d3   : > { %v1611_v30 = vsel %vm556_vm2, %v1610_v29, 0.0 }
 0x8d4   : > { %1612 = vadd.xlane.f32.xlu0 %v1611_v30 }
 0x961   : > { %v1613_v31 = vpop.xlane.xlu0 %1612 }
 0x962   : > { %v1614_v32 = vmul.f32 0.03125, %v1613_v31 }
 0x964   : > { %v1615_v33 = vadd.f32 1e-05, %v1614_v32 }
 0x966   : > { %2063 = vrsqrt.f32 %v1615_v33 }
 0x970   : > { %v2064_v34 = vpop.eup %2063 }
 0x971   : > { %v1617_v37 = vmul.f32 %v2064_v34, %v1609_v21  ;;  %1636 = sbr.rel (%p1783_p0) target bundleno = 2424 (0x978), region = 84 }
 0x973   : > { %v1624_v40 = vmul.f32 %v1781_v36, %v1617_v37 }
 0x975   : > { %v1631_v41 = vadd.f32 %v1782_v38, %v1624_v40 }
 0x977   : > { %1632 = vst.msk [vmem:[#allocation2] sm:$0xff] %vm556_vm2, %v1631_v41  ;;  %1637 = vst.msk [vmem:[%s481_s29] sm:$0xff] (!%p1783_p0), %vm556_vm2, %v1631_v41 }
 0x978 PF: > { %s1785_s20 = sshll.u32 %s2147_s17, 7  ;;  %s1652_s19 = sshll.u32 %s481_s29, 4  ;;  %s1653_s19 = int_to_ptr.vmem [resolvable:$true] %s1652_s19 }
 0x979   : > { %s2566_s27 = scalar_lea.hbm %s2631_s14, %s1785_s20  ;;  %s2652_s16 = sand.u32 1, %s2135_s30  }
 0x97a   : > { %s1639_s18 = scalar_lea.sflag [#allocation4], %s2652_s16  ;;  %s2065_s28 = scalar_lea.vmem %s1653_s19, 128 }
 0x97b   : > { %p2066_p1 = scmp.ne.s32.totalorder %s1653_s19, %s2065_s28  ;;  %s2165_s15 = smov [#allocation3]  }
 0x97c   : > { %s2069_s24 = sshll.u32 %s2165_s15, 4  ;;  %s2070_s24 = int_to_ptr.vmem [resolvable:$false] %s2069_s24 }
 0x97d   : > { %p2067_p2 = pnand %p2066_p1, %p2290_p3  ;;  %s2071_s21 = scalar_lea.vmem %s2070_s24, 256 }
 0x97e   : > { %p2072_p5 = scmp.lt.s32.totalorder %s1653_s19, %s2070_s24  ;;  %p2073_p6 = scmp.lt.s32.totalorder %s2071_s21, %s2065_s28 }
 0x97f   : > { %p2068_p4 = pneg %p2067_p2 }
 0x980   : > { %p2074_p7 = por %p2073_p6, %p2072_p5 }
 0x982   : > { %p2075_p8 = pnand %p2074_p7, %p2068_p4 }
 0x984   : > { %2078 = shalt.err (!%p2075_p8)
}
 0x985   : > { %s2079_s29 = scalar_lea.hbm %s2566_s27, 128  ;;  %s2083_s20 = scalar_lea.hbm %s2631_s14, 256 }
 0x986   : > { %p2080_p10 = scmp.ne.s32.totalorder %s2566_s27, %s2079_s29  ;;  %p2084_p13 = scmp.lt.u32.totalorder %s2566_s27, %s2631_s14 }
 0x987   : > { %p2085_p0 = scmp.lt.u32.totalorder %s2083_s20, %s2079_s29  ;;  %p2087_p2 = scmp.lt.u32.totalorder %s2079_s29, %s2566_s27 }
 0x988   : > { %p2081_p11 = pnand %p2080_p10, %p2290_p3 }
 0x989   : > { %p2086_p1 = por %p2085_p0, %p2084_p13 }
 0x98a   : > { %p2082_p12 = pneg %p2081_p11 }
 0x98b   : > { %p2088_p4 = por %p2087_p2, %p2086_p1 }
 0x98d   : > { %p2089_p5 = pnand %p2088_p4, %p2082_p12 }
 0x98f   : > { %2092 = shalt.err (!%p2089_p5)
}
 0x990   : > { %1956 = dma.vmem_to_hbm [thread:$0]  (%p2290_p3), %s1653_s19, 128, %s2566_s27, %s1639_s18  }
 0x991 PF: > { %s2653_s16 = sld [smem:[#allocation10_spill]]  ;;  %s2654_s28 = sld [smem:[#allocation6_spill]] }
 0x997   : > { %p1962_p6 = scmp.ge.s32.totalorder %s2653_s16, 2  ;;  %s1664_s24 = sand.u32 1, %s2654_s28  }
 0x998   : > { %s1665_s21 = scalar_lea.sflag [#allocation4], %s1664_s24 }
 0x999   : > { %p1959_p7 = pnand %p1962_p6, %p2300_p9 }
 0x99b   : > { %2126 = dma.done.wait (!%p1959_p7), %s1665_s21, 128  }
 0x99c   : > { %2128 = vsyncadd (!%p1959_p7), %s1665_s21, 4294967168  ;;  %s27_s20 = sadd.s32 1, %s2653_s16   ;;  %s2656_s17 = sld [smem:[#allocation7_spill]] }
 0x99d   : > { %p24_p8 = scmp.ge.s32.totalorder %s27_s20, 6   ;;  %s2657_s15 = sld [smem:[#allocation14_spill]] }
 0x99e   : > { %s2658_s16 = sld [smem:[#allocation8_spill]]  ;;  %s2659_s25 = sld [smem:[#allocation9_spill]] }
 0x99f   : > { %s2660_s18 = sld [smem:[#allocation11_spill]]  ;;  %s2661_s19 = sld [smem:[#allocation12_spill]] }
 0x9a0   : > { %s2662_s29 = smov %s2135_s30  ;;  %26 = sbr.rel (!%p24_p8) target bundleno = 5 (0x5), region = 122 }
 0x9a2   : > { %s2663_s30 = smov %s2656_s17 }
 0x9a4   : > { %s2664_s17 = smov %s2659_s25 }
 0x9a7   :  { %1670 = vsyncpa [#allocation4], 1 }
 0x9a8   :  { %1672 = vsyncpa [#allocation4 + $0x1], 1 }

</bundles_post_ra>
